<compile_context>
chip_gen: v7x
topology: tpu7x:2x2x1
jax: 0.10.0
libtpu: 0.0.40
codegen_flags: <defaults>
</compile_context>

<pallas_src>
import functools

import jax
import jax.numpy as jnp
from jax.experimental import pallas as pl
from jax.experimental.pallas import tpu as pltpu


def _round_up(n, m):
    return ((n + m - 1) // m) * m


def _interleave_gates(a_l0, a_l1, hidden):
    """Column-interleave two (rows, 4H) gate matrices into (rows, 8H):
    [i0 i1 | f0 f1 | g0 g1 | o0 o1]   (torch gate order i, f, g, o)."""
    parts = []
    for k in range(4):
        parts.append(a_l0[..., k * hidden:(k + 1) * hidden])
        parts.append(a_l1[..., k * hidden:(k + 1) * hidden])
    return jnp.concatenate(parts, axis=-1)


def _fused_lstm_fc_kernel(x_ref, slab_ref, out_ref, h1_ref, *,
                          B, T, I, H, O, rows):
    """x_ref:   (T*B, I)   time-major rows (t, b)
       slab_ref:(rows, 8H) packed parameters (see wrapper for layout)
       out_ref: (T*B, O)   time-major rows (t, b)
       h1_ref:  (T*B, H)   scratch: layer-1 hidden stack, time-major."""
    f32 = jnp.float32
    H2 = 2 * H                                   # one interleaved gate block
    r_wstep, r_wih0, r_b0, r_b1, r_wfc, r_bfc = rows

    w_step = slab_ref[r_wstep:r_wstep + H2, :]   # (2H, 8H) fused recurrent weight
    wih0 = slab_ref[r_wih0:r_wih0 + I, :]        # (I, 8H)  layer-1 columns are 0
    b0 = slab_ref[r_b0:r_b0 + 1, :]              # (1, 8H)  layer-1 columns are 0
    b1 = slab_ref[r_b1:r_b1 + 1, :]              # (1, 8H)  layer-0 columns are 0

    # Hoisted layer-0 input projection for ALL timesteps (bias folded).
    # Layer-1 columns of xp0 are exactly zero by construction.
    xp0 = jnp.dot(x_ref[...], wih0, preferred_element_type=f32) + b0   # (T*B, 8H)

    def fused_cell(g_pre, c_prev):
        """LSTM cell update for BOTH layers at once on the interleaved (B, 8H)
        pre-activation: ONE full-width sigmoid + ONE tanh (+ tanh(c))."""
        sg = jax.nn.sigmoid(g_pre)
        tg = jnp.tanh(g_pre)
        i_b = sg[:, 0 * H2:1 * H2]
        f_b = sg[:, 1 * H2:2 * H2]
        g_b = tg[:, 2 * H2:3 * H2]
        o_b = sg[:, 3 * H2:4 * H2]
        c_new = f_b * c_prev + i_b * g_b
        h_new = o_b * jnp.tanh(c_new)
        return h_new, c_new        # layout: [:, :H] = layer-0, [:, H:2H] = layer-1

    # Bootstrap round: h0_0 = cell(xp0_0) with zero initial state.  The layer-1
    # half of the pre-activation is 0, so c1 = sig(0)*tanh(0) = 0 and
    # h1 = sig(0)*tanh(0) = 0 -> layer-1 state correctly stays at its init.
    h, c = fused_cell(xp0[0:B, :], jnp.zeros((B, H2), f32))
    # Invariant entering round t:  h = [h0_t | h1_{t-1}],  c = [c0_t | c1_{t-1}].

    # T fused rounds, fully unrolled at trace time (T small & static): one
    # (B,2H)@(2H,8H) matmul and one sigmoid/tanh round per step serve BOTH layers.
    for t in range(T):
        m = jnp.dot(h, w_step, preferred_element_type=f32)              # (B, 8H)
        nxt = ((t + 1) % T) * B      # last round reuses block 0: its layer-0
        g_pre = m + b1 + xp0[nxt:nxt + B, :]   # half is garbage and never used
        h, c = fused_cell(g_pre, c)
        # Stack h1_t time-major; these 2-row stores ride idle vst slots.
        h1_ref[t * B:(t + 1) * B, :] = h[:, H:H2]

    # FC head: single matmul (Wfc zero-padded to the 8H slab lane width),
    # bias add, single output store.
    wfc = slab_ref[r_wfc:r_wfc + H, :]           # (H, 8H), cols [O:] are zero
    bfc = slab_ref[r_bfc:r_bfc + 1, :]           # (1, 8H)
    y = jnp.dot(h1_ref[...], wfc, preferred_element_type=f32) + bfc     # (T*B, 8H)
    out_ref[...] = y[:, :O].astype(out_ref.dtype)


@functools.partial(jax.jit, static_argnames=("hidden_size", "output_size"))
def coordinate_correction_forward(x, params, *, hidden_size, output_size):
    """x: (B, T, input_size) f32, batch_first -> (B, T, output_size) f32."""
    B, T, I = x.shape
    H, O = hidden_size, output_size
    H8 = 8 * H
    f32 = jnp.float32

    # ---- pack all parameters into ONE (rows, 8H) f32 slab -> one input DMA ----
    z_h = jnp.zeros((H, 4 * H), f32)
    w_step = jnp.concatenate(
        [_interleave_gates(params["whh0"], params["wih1"], H),   # rows 0:H  (h0)
         _interleave_gates(z_h, params["whh1"], H)],             # rows H:2H (h1)
        axis=0)                                                  # (2H, 8H)
    wih0_p = _interleave_gates(params["wih0"], jnp.zeros((I, 4 * H), f32), H)
    b0_p = _interleave_gates(params["b0"], jnp.zeros((1, 4 * H), f32), H)
    b1_p = _interleave_gates(jnp.zeros((1, 4 * H), f32), params["b1"], H)
    wfc_p = jnp.zeros((H, H8), f32).at[:, :O].set(params["wfc"])
    bfc_p = jnp.zeros((1, H8), f32).at[:, :O].set(params["bfc"])

    def pad8(a):  # 8-row alignment so every kernel-side slab slice is tile-aligned
        r = _round_up(a.shape[0], 8)
        if r == a.shape[0]:
            return a
        return jnp.concatenate([a, jnp.zeros((r - a.shape[0], a.shape[1]), f32)],
                               axis=0)

    sections = [pad8(s) for s in (w_step, wih0_p, b0_p, b1_p, wfc_p, bfc_p)]
    rows, r = [], 0
    for s in sections:
        rows.append(r)
        r += s.shape[0]
    slab = jnp.concatenate(sections, axis=0)          # (128, 8H) at H=32

    # batch_first (B, T, I) -> time-major 2-D rows (t, b): (T*B, I)
    x_tm = jnp.transpose(x, (1, 0, 2)).reshape(T * B, I)

    kernel = functools.partial(_fused_lstm_fc_kernel,
                               B=B, T=T, I=I, H=H, O=O, rows=tuple(rows))
    vmem = pl.BlockSpec(memory_space=pltpu.MemorySpace.VMEM)

    out_tm = pl.pallas_call(
        kernel,
        out_shape=jax.ShapeDtypeStruct((T * B, O), f32),
        in_specs=[vmem, vmem],
        out_specs=vmem,
        scratch_shapes=[pltpu.VMEM((T * B, H), f32)],   # h1 stack (time-major)
    )(x_tm, slab)

    # time-major rows -> batch_first (B, T, O); tiny, free-ish XLA ops.
    return jnp.transpose(out_tm.reshape(T, B, O), (1, 0, 2))


def init_params(key, input_size, hidden_size, output_size):
    """Deterministic synthetic parameters; shapes match torch.nn.LSTM/Linear,
    pre-transposed so the kernel computes x @ W (torch stores W as (4H, in))."""
    H = hidden_size
    ks = jax.random.split(key, 10)
    s = 0.1
    return {
        # layer 0
        "wih0": s * jax.random.normal(ks[0], (input_size, 4 * H), jnp.float32),
        "whh0": s * jax.random.normal(ks[1], (H, 4 * H), jnp.float32),
        "b0": (s * jax.random.normal(ks[2], (1, 4 * H), jnp.float32)
               + s * jax.random.normal(ks[3], (1, 4 * H), jnp.float32)),  # b_ih + b_hh
        # layer 1
        "wih1": s * jax.random.normal(ks[4], (H, 4 * H), jnp.float32),
        "whh1": s * jax.random.normal(ks[5], (H, 4 * H), jnp.float32),
        "b1": (s * jax.random.normal(ks[6], (1, 4 * H), jnp.float32)
               + s * jax.random.normal(ks[7], (1, 4 * H), jnp.float32)),
        # fc
        "wfc": s * jax.random.normal(ks[8], (H, output_size), jnp.float32),
        "bfc": s * jax.random.normal(ks[9], (1, output_size), jnp.float32),
    }


def reference_forward(x, params, hidden_size):
    """Pure-JAX reference (lax.scan) mirroring torch.nn.LSTM semantics."""
    B, T, _ = x.shape
    H = hidden_size

    def cell(h_prev, c_prev, x_t, wih, whh, b):
        g = x_t @ wih + h_prev @ whh + b
        i = jax.nn.sigmoid(g[:, 0:H])
        f = jax.nn.sigmoid(g[:, H:2 * H])
        gg = jnp.tanh(g[:, 2 * H:3 * H])
        o = jax.nn.sigmoid(g[:, 3 * H:4 * H])
        c = f * c_prev + i * gg
        h = o * jnp.tanh(c)
        return h, c

    def step(carry, x_t):
        h0, c0, h1, c1 = carry
        h0, c0 = cell(h0, c0, x_t, params["wih0"], params["whh0"], params["b0"])
        h1, c1 = cell(h1, c1, h0, params["wih1"], params["whh1"], params["b1"])
        y = h1 @ params["wfc"] + params["bfc"]
        return (h0, c0, h1, c1), y

    z = jnp.zeros((B, H), jnp.float32)
    _, ys = jax.lax.scan(step, (z, z, z, z), jnp.transpose(x, (1, 0, 2)))
    return jnp.transpose(ys, (1, 0, 2))


if __name__ == "__main__":
    # Small shapes consistent with the module: (batch, seq, input_size)
    B, T = 2, 8
    input_size, hidden_size, output_size = 4, 32, 2

    key = jax.random.PRNGKey(0)
    k_x, k_p = jax.random.split(key)
    x = jax.random.normal(k_x, (B, T, input_size), jnp.float32)
    params = init_params(k_p, input_size, hidden_size, output_size)

    out = coordinate_correction_forward(
        x, params, hidden_size=hidden_size, output_size=output_size)
    out = jax.block_until_ready(out)

    ref = reference_forward(x, params, hidden_size)
    assert out.shape == (B, T, output_size)
    assert jnp.allclose(out, ref, atol=1e-4, rtol=1e-4), \
        float(jnp.max(jnp.abs(out - ref)))

    print("KERNEL_OK")
</pallas_src>

<mosaic_0001>
module attributes {stable_mosaic.version = 11 : i64} {
  func.func @_fused_lstm_fc_kernel(%arg0: memref<16x4xf32, #tpu.memory_space<vmem>>, %arg1: memref<128x256xf32, #tpu.memory_space<vmem>>, %arg2: memref<16x2xf32, #tpu.memory_space<vmem>>, %arg3: memref<16x32xf32, #tpu.memory_space<vmem>>) attributes {dimension_semantics = [], scalar_prefetch = 0 : i64, scratch_operands = 1 : i64, tpu.core_type = #tpu.core_type<tc>} {
    %c0 = arith.constant 0 : index
    %c0_0 = arith.constant 0 : index
    %0 = vector.load %arg1[%c0, %c0_0] : memref<128x256xf32, #tpu.memory_space<vmem>>, vector<64x256xf32>
    %c64 = arith.constant 64 : index
    %c0_1 = arith.constant 0 : index
    %1 = vector.load %arg1[%c64, %c0_1] : memref<128x256xf32, #tpu.memory_space<vmem>>, vector<4x256xf32>
    %c72 = arith.constant 72 : index
    %c0_2 = arith.constant 0 : index
    %2 = vector.load %arg1[%c72, %c0_2] : memref<128x256xf32, #tpu.memory_space<vmem>>, vector<1x256xf32>
    %c80 = arith.constant 80 : index
    %c0_3 = arith.constant 0 : index
    %3 = vector.load %arg1[%c80, %c0_3] : memref<128x256xf32, #tpu.memory_space<vmem>>, vector<1x256xf32>
    %c0_4 = arith.constant 0 : index
    %c0_5 = arith.constant 0 : index
    %4 = vector.load %arg0[%c0_4, %c0_5] : memref<16x4xf32, #tpu.memory_space<vmem>>, vector<16x4xf32>
    %cst = arith.constant dense<0.000000e+00> : vector<16x256xf32>
    %5 = tpu.matmul %4, %1, %cst {dimension_numbers = #tpu.dot_dimension_numbers<[1], [0], [0], [1], [0, 0, 1, 1], [], []>} : vector<16x4xf32>, vector<4x256xf32>, vector<16x256xf32> -> vector<16x256xf32>
    %6 = vector.broadcast %2 : vector<1x256xf32> to vector<16x256xf32>
    %7 = arith.addf %5, %6 : vector<16x256xf32>
    %8 = vector.extract_strided_slice %7 {offsets = [0, 0], sizes = [2, 256], strides = [1, 1]} : vector<16x256xf32> to vector<2x256xf32>
    %cst_6 = arith.constant 0.000000e+00 : f32
    %9 = vector.broadcast %cst_6 : f32 to vector<2x64xf32>
    %10 = arith.negf %8 : vector<2x256xf32>
    %11 = math.exp %10 : vector<2x256xf32>
    %cst_7 = arith.constant 1.000000e+00 : f32
    %12 = vector.broadcast %cst_7 : f32 to vector<2x256xf32>
    %13 = arith.addf %12, %11 : vector<2x256xf32>
    %14 = arith.divf %12, %13 : vector<2x256xf32>
    %15 = math.tanh %8 : vector<2x256xf32>
    %16 = vector.extract_strided_slice %14 {offsets = [0, 0], sizes = [2, 64], strides = [1, 1]} : vector<2x256xf32> to vector<2x64xf32>
    %17 = vector.extract_strided_slice %14 {offsets = [0, 64], sizes = [2, 64], strides = [1, 1]} : vector<2x256xf32> to vector<2x64xf32>
    %18 = vector.extract_strided_slice %15 {offsets = [0, 128], sizes = [2, 64], strides = [1, 1]} : vector<2x256xf32> to vector<2x64xf32>
    %19 = vector.extract_strided_slice %14 {offsets = [0, 192], sizes = [2, 64], strides = [1, 1]} : vector<2x256xf32> to vector<2x64xf32>
    %20 = arith.mulf %17, %9 : vector<2x64xf32>
    %21 = arith.mulf %16, %18 : vector<2x64xf32>
    %22 = arith.addf %20, %21 : vector<2x64xf32>
    %23 = math.tanh %22 : vector<2x64xf32>
    %24 = arith.mulf %19, %23 : vector<2x64xf32>
    %cst_8 = arith.constant dense<0.000000e+00> : vector<2x256xf32>
    %25 = tpu.matmul %24, %0, %cst_8 {dimension_numbers = #tpu.dot_dimension_numbers<[1], [0], [0], [1], [0, 0, 1, 1], [], []>} : vector<2x64xf32>, vector<64x256xf32>, vector<2x256xf32> -> vector<2x256xf32>
    %26 = vector.broadcast %3 : vector<1x256xf32> to vector<2x256xf32>
    %27 = arith.addf %25, %26 : vector<2x256xf32>
    %28 = vector.extract_strided_slice %7 {offsets = [2, 0], sizes = [2, 256], strides = [1, 1]} : vector<16x256xf32> to vector<2x256xf32>
    %29 = arith.addf %27, %28 : vector<2x256xf32>
    %30 = arith.negf %29 : vector<2x256xf32>
    %31 = math.exp %30 : vector<2x256xf32>
    %cst_9 = arith.constant 1.000000e+00 : f32
    %32 = vector.broadcast %cst_9 : f32 to vector<2x256xf32>
    %33 = arith.addf %32, %31 : vector<2x256xf32>
    %34 = arith.divf %32, %33 : vector<2x256xf32>
    %35 = math.tanh %29 : vector<2x256xf32>
    %36 = vector.extract_strided_slice %34 {offsets = [0, 0], sizes = [2, 64], strides = [1, 1]} : vector<2x256xf32> to vector<2x64xf32>
    %37 = vector.extract_strided_slice %34 {offsets = [0, 64], sizes = [2, 64], strides = [1, 1]} : vector<2x256xf32> to vector<2x64xf32>
    %38 = vector.extract_strided_slice %35 {offsets = [0, 128], sizes = [2, 64], strides = [1, 1]} : vector<2x256xf32> to vector<2x64xf32>
    %39 = vector.extract_strided_slice %34 {offsets = [0, 192], sizes = [2, 64], strides = [1, 1]} : vector<2x256xf32> to vector<2x64xf32>
    %40 = arith.mulf %37, %22 : vector<2x64xf32>
    %41 = arith.mulf %36, %38 : vector<2x64xf32>
    %42 = arith.addf %40, %41 : vector<2x64xf32>
    %43 = math.tanh %42 : vector<2x64xf32>
    %44 = arith.mulf %39, %43 : vector<2x64xf32>
    %45 = vector.extract_strided_slice %44 {offsets = [0, 32], sizes = [2, 32], strides = [1, 1]} : vector<2x64xf32> to vector<2x32xf32>
    %c0_10 = arith.constant 0 : index
    %c0_11 = arith.constant 0 : index
    %46 = vector.load %arg3[%c0_10, %c0_11] : memref<16x32xf32, #tpu.memory_space<vmem>>, vector<2x32xf32>
    tpu.vector_store %arg3[%c0_10, %c0_11], %45 {strides = array<i32>} : memref<16x32xf32, #tpu.memory_space<vmem>>, vector<2x32xf32>,
    %cst_12 = arith.constant dense<0.000000e+00> : vector<2x256xf32>
    %47 = tpu.matmul %44, %0, %cst_12 {dimension_numbers = #tpu.dot_dimension_numbers<[1], [0], [0], [1], [0, 0, 1, 1], [], []>} : vector<2x64xf32>, vector<64x256xf32>, vector<2x256xf32> -> vector<2x256xf32>
    %48 = vector.broadcast %3 : vector<1x256xf32> to vector<2x256xf32>
    %49 = arith.addf %47, %48 : vector<2x256xf32>
    %50 = vector.extract_strided_slice %7 {offsets = [4, 0], sizes = [2, 256], strides = [1, 1]} : vector<16x256xf32> to vector<2x256xf32>
    %51 = arith.addf %49, %50 : vector<2x256xf32>
    %52 = arith.negf %51 : vector<2x256xf32>
    %53 = math.exp %52 : vector<2x256xf32>
    %cst_13 = arith.constant 1.000000e+00 : f32
    %54 = vector.broadcast %cst_13 : f32 to vector<2x256xf32>
    %55 = arith.addf %54, %53 : vector<2x256xf32>
    %56 = arith.divf %54, %55 : vector<2x256xf32>
    %57 = math.tanh %51 : vector<2x256xf32>
    %58 = vector.extract_strided_slice %56 {offsets = [0, 0], sizes = [2, 64], strides = [1, 1]} : vector<2x256xf32> to vector<2x64xf32>
    %59 = vector.extract_strided_slice %56 {offsets = [0, 64], sizes = [2, 64], strides = [1, 1]} : vector<2x256xf32> to vector<2x64xf32>
    %60 = vector.extract_strided_slice %57 {offsets = [0, 128], sizes = [2, 64], strides = [1, 1]} : vector<2x256xf32> to vector<2x64xf32>
    %61 = vector.extract_strided_slice %56 {offsets = [0, 192], sizes = [2, 64], strides = [1, 1]} : vector<2x256xf32> to vector<2x64xf32>
    %62 = arith.mulf %59, %42 : vector<2x64xf32>
    %63 = arith.mulf %58, %60 : vector<2x64xf32>
    %64 = arith.addf %62, %63 : vector<2x64xf32>
    %65 = math.tanh %64 : vector<2x64xf32>
    %66 = arith.mulf %61, %65 : vector<2x64xf32>
    %67 = vector.extract_strided_slice %66 {offsets = [0, 32], sizes = [2, 32], strides = [1, 1]} : vector<2x64xf32> to vector<2x32xf32>
    %c2 = arith.constant 2 : index
    %c0_14 = arith.constant 0 : index
    %68 = vector.load %arg3[%c2, %c0_14] : memref<16x32xf32, #tpu.memory_space<vmem>>, vector<2x32xf32>
    tpu.vector_store %arg3[%c2, %c0_14], %67 {strides = array<i32>} : memref<16x32xf32, #tpu.memory_space<vmem>>, vector<2x32xf32>,
    %cst_15 = arith.constant dense<0.000000e+00> : vector<2x256xf32>
    %69 = tpu.matmul %66, %0, %cst_15 {dimension_numbers = #tpu.dot_dimension_numbers<[1], [0], [0], [1], [0, 0, 1, 1], [], []>} : vector<2x64xf32>, vector<64x256xf32>, vector<2x256xf32> -> vector<2x256xf32>
    %70 = vector.broadcast %3 : vector<1x256xf32> to vector<2x256xf32>
    %71 = arith.addf %69, %70 : vector<2x256xf32>
    %72 = vector.extract_strided_slice %7 {offsets = [6, 0], sizes = [2, 256], strides = [1, 1]} : vector<16x256xf32> to vector<2x256xf32>
    %73 = arith.addf %71, %72 : vector<2x256xf32>
    %74 = arith.negf %73 : vector<2x256xf32>
    %75 = math.exp %74 : vector<2x256xf32>
    %cst_16 = arith.constant 1.000000e+00 : f32
    %76 = vector.broadcast %cst_16 : f32 to vector<2x256xf32>
    %77 = arith.addf %76, %75 : vector<2x256xf32>
    %78 = arith.divf %76, %77 : vector<2x256xf32>
    %79 = math.tanh %73 : vector<2x256xf32>
    %80 = vector.extract_strided_slice %78 {offsets = [0, 0], sizes = [2, 64], strides = [1, 1]} : vector<2x256xf32> to vector<2x64xf32>
    %81 = vector.extract_strided_slice %78 {offsets = [0, 64], sizes = [2, 64], strides = [1, 1]} : vector<2x256xf32> to vector<2x64xf32>
    %82 = vector.extract_strided_slice %79 {offsets = [0, 128], sizes = [2, 64], strides = [1, 1]} : vector<2x256xf32> to vector<2x64xf32>
    %83 = vector.extract_strided_slice %78 {offsets = [0, 192], sizes = [2, 64], strides = [1, 1]} : vector<2x256xf32> to vector<2x64xf32>
    %84 = arith.mulf %81, %64 : vector<2x64xf32>
    %85 = arith.mulf %80, %82 : vector<2x64xf32>
    %86 = arith.addf %84, %85 : vector<2x64xf32>
    %87 = math.tanh %86 : vector<2x64xf32>
    %88 = arith.mulf %83, %87 : vector<2x64xf32>
    %89 = vector.extract_strided_slice %88 {offsets = [0, 32], sizes = [2, 32], strides = [1, 1]} : vector<2x64xf32> to vector<2x32xf32>
    %c4 = arith.constant 4 : index
    %c0_17 = arith.constant 0 : index
    %90 = vector.load %arg3[%c4, %c0_17] : memref<16x32xf32, #tpu.memory_space<vmem>>, vector<2x32xf32>
    tpu.vector_store %arg3[%c4, %c0_17], %89 {strides = array<i32>} : memref<16x32xf32, #tpu.memory_space<vmem>>, vector<2x32xf32>,
    %cst_18 = arith.constant dense<0.000000e+00> : vector<2x256xf32>
    %91 = tpu.matmul %88, %0, %cst_18 {dimension_numbers = #tpu.dot_dimension_numbers<[1], [0], [0], [1], [0, 0, 1, 1], [], []>} : vector<2x64xf32>, vector<64x256xf32>, vector<2x256xf32> -> vector<2x256xf32>
    %92 = vector.broadcast %3 : vector<1x256xf32> to vector<2x256xf32>
    %93 = arith.addf %91, %92 : vector<2x256xf32>
    %94 = vector.extract_strided_slice %7 {offsets = [8, 0], sizes = [2, 256], strides = [1, 1]} : vector<16x256xf32> to vector<2x256xf32>
    %95 = arith.addf %93, %94 : vector<2x256xf32>
    %96 = arith.negf %95 : vector<2x256xf32>
    %97 = math.exp %96 : vector<2x256xf32>
    %cst_19 = arith.constant 1.000000e+00 : f32
    %98 = vector.broadcast %cst_19 : f32 to vector<2x256xf32>
    %99 = arith.addf %98, %97 : vector<2x256xf32>
    %100 = arith.divf %98, %99 : vector<2x256xf32>
    %101 = math.tanh %95 : vector<2x256xf32>
    %102 = vector.extract_strided_slice %100 {offsets = [0, 0], sizes = [2, 64], strides = [1, 1]} : vector<2x256xf32> to vector<2x64xf32>
    %103 = vector.extract_strided_slice %100 {offsets = [0, 64], sizes = [2, 64], strides = [1, 1]} : vector<2x256xf32> to vector<2x64xf32>
    %104 = vector.extract_strided_slice %101 {offsets = [0, 128], sizes = [2, 64], strides = [1, 1]} : vector<2x256xf32> to vector<2x64xf32>
    %105 = vector.extract_strided_slice %100 {offsets = [0, 192], sizes = [2, 64], strides = [1, 1]} : vector<2x256xf32> to vector<2x64xf32>
    %106 = arith.mulf %103, %86 : vector<2x64xf32>
    %107 = arith.mulf %102, %104 : vector<2x64xf32>
    %108 = arith.addf %106, %107 : vector<2x64xf32>
    %109 = math.tanh %108 : vector<2x64xf32>
    %110 = arith.mulf %105, %109 : vector<2x64xf32>
    %111 = vector.extract_strided_slice %110 {offsets = [0, 32], sizes = [2, 32], strides = [1, 1]} : vector<2x64xf32> to vector<2x32xf32>
    %c6 = arith.constant 6 : index
    %c0_20 = arith.constant 0 : index
    %112 = vector.load %arg3[%c6, %c0_20] : memref<16x32xf32, #tpu.memory_space<vmem>>, vector<2x32xf32>
    tpu.vector_store %arg3[%c6, %c0_20], %111 {strides = array<i32>} : memref<16x32xf32, #tpu.memory_space<vmem>>, vector<2x32xf32>,
    %cst_21 = arith.constant dense<0.000000e+00> : vector<2x256xf32>
    %113 = tpu.matmul %110, %0, %cst_21 {dimension_numbers = #tpu.dot_dimension_numbers<[1], [0], [0], [1], [0, 0, 1, 1], [], []>} : vector<2x64xf32>, vector<64x256xf32>, vector<2x256xf32> -> vector<2x256xf32>
    %114 = vector.broadcast %3 : vector<1x256xf32> to vector<2x256xf32>
    %115 = arith.addf %113, %114 : vector<2x256xf32>
    %116 = vector.extract_strided_slice %7 {offsets = [10, 0], sizes = [2, 256], strides = [1, 1]} : vector<16x256xf32> to vector<2x256xf32>
    %117 = arith.addf %115, %116 : vector<2x256xf32>
    %118 = arith.negf %117 : vector<2x256xf32>
    %119 = math.exp %118 : vector<2x256xf32>
    %cst_22 = arith.constant 1.000000e+00 : f32
    %120 = vector.broadcast %cst_22 : f32 to vector<2x256xf32>
    %121 = arith.addf %120, %119 : vector<2x256xf32>
    %122 = arith.divf %120, %121 : vector<2x256xf32>
    %123 = math.tanh %117 : vector<2x256xf32>
    %124 = vector.extract_strided_slice %122 {offsets = [0, 0], sizes = [2, 64], strides = [1, 1]} : vector<2x256xf32> to vector<2x64xf32>
    %125 = vector.extract_strided_slice %122 {offsets = [0, 64], sizes = [2, 64], strides = [1, 1]} : vector<2x256xf32> to vector<2x64xf32>
    %126 = vector.extract_strided_slice %123 {offsets = [0, 128], sizes = [2, 64], strides = [1, 1]} : vector<2x256xf32> to vector<2x64xf32>
    %127 = vector.extract_strided_slice %122 {offsets = [0, 192], sizes = [2, 64], strides = [1, 1]} : vector<2x256xf32> to vector<2x64xf32>
    %128 = arith.mulf %125, %108 : vector<2x64xf32>
    %129 = arith.mulf %124, %126 : vector<2x64xf32>
    %130 = arith.addf %128, %129 : vector<2x64xf32>
    %131 = math.tanh %130 : vector<2x64xf32>
    %132 = arith.mulf %127, %131 : vector<2x64xf32>
    %133 = vector.extract_strided_slice %132 {offsets = [0, 32], sizes = [2, 32], strides = [1, 1]} : vector<2x64xf32> to vector<2x32xf32>
    %c8 = arith.constant 8 : index
    %c0_23 = arith.constant 0 : index
    %134 = vector.load %arg3[%c8, %c0_23] : memref<16x32xf32, #tpu.memory_space<vmem>>, vector<2x32xf32>
    tpu.vector_store %arg3[%c8, %c0_23], %133 {strides = array<i32>} : memref<16x32xf32, #tpu.memory_space<vmem>>, vector<2x32xf32>,
    %cst_24 = arith.constant dense<0.000000e+00> : vector<2x256xf32>
    %135 = tpu.matmul %132, %0, %cst_24 {dimension_numbers = #tpu.dot_dimension_numbers<[1], [0], [0], [1], [0, 0, 1, 1], [], []>} : vector<2x64xf32>, vector<64x256xf32>, vector<2x256xf32> -> vector<2x256xf32>
    %136 = vector.broadcast %3 : vector<1x256xf32> to vector<2x256xf32>
    %137 = arith.addf %135, %136 : vector<2x256xf32>
    %138 = vector.extract_strided_slice %7 {offsets = [12, 0], sizes = [2, 256], strides = [1, 1]} : vector<16x256xf32> to vector<2x256xf32>
    %139 = arith.addf %137, %138 : vector<2x256xf32>
    %140 = arith.negf %139 : vector<2x256xf32>
    %141 = math.exp %140 : vector<2x256xf32>
    %cst_25 = arith.constant 1.000000e+00 : f32
    %142 = vector.broadcast %cst_25 : f32 to vector<2x256xf32>
    %143 = arith.addf %142, %141 : vector<2x256xf32>
    %144 = arith.divf %142, %143 : vector<2x256xf32>
    %145 = math.tanh %139 : vector<2x256xf32>
    %146 = vector.extract_strided_slice %144 {offsets = [0, 0], sizes = [2, 64], strides = [1, 1]} : vector<2x256xf32> to vector<2x64xf32>
    %147 = vector.extract_strided_slice %144 {offsets = [0, 64], sizes = [2, 64], strides = [1, 1]} : vector<2x256xf32> to vector<2x64xf32>
    %148 = vector.extract_strided_slice %145 {offsets = [0, 128], sizes = [2, 64], strides = [1, 1]} : vector<2x256xf32> to vector<2x64xf32>
    %149 = vector.extract_strided_slice %144 {offsets = [0, 192], sizes = [2, 64], strides = [1, 1]} : vector<2x256xf32> to vector<2x64xf32>
    %150 = arith.mulf %147, %130 : vector<2x64xf32>
    %151 = arith.mulf %146, %148 : vector<2x64xf32>
    %152 = arith.addf %150, %151 : vector<2x64xf32>
    %153 = math.tanh %152 : vector<2x64xf32>
    %154 = arith.mulf %149, %153 : vector<2x64xf32>
    %155 = vector.extract_strided_slice %154 {offsets = [0, 32], sizes = [2, 32], strides = [1, 1]} : vector<2x64xf32> to vector<2x32xf32>
    %c10 = arith.constant 10 : index
    %c0_26 = arith.constant 0 : index
    %156 = vector.load %arg3[%c10, %c0_26] : memref<16x32xf32, #tpu.memory_space<vmem>>, vector<2x32xf32>
    tpu.vector_store %arg3[%c10, %c0_26], %155 {strides = array<i32>} : memref<16x32xf32, #tpu.memory_space<vmem>>, vector<2x32xf32>,
    %cst_27 = arith.constant dense<0.000000e+00> : vector<2x256xf32>
    %157 = tpu.matmul %154, %0, %cst_27 {dimension_numbers = #tpu.dot_dimension_numbers<[1], [0], [0], [1], [0, 0, 1, 1], [], []>} : vector<2x64xf32>, vector<64x256xf32>, vector<2x256xf32> -> vector<2x256xf32>
    %158 = vector.broadcast %3 : vector<1x256xf32> to vector<2x256xf32>
    %159 = arith.addf %157, %158 : vector<2x256xf32>
    %160 = vector.extract_strided_slice %7 {offsets = [14, 0], sizes = [2, 256], strides = [1, 1]} : vector<16x256xf32> to vector<2x256xf32>
    %161 = arith.addf %159, %160 : vector<2x256xf32>
    %162 = arith.negf %161 : vector<2x256xf32>
    %163 = math.exp %162 : vector<2x256xf32>
    %cst_28 = arith.constant 1.000000e+00 : f32
    %164 = vector.broadcast %cst_28 : f32 to vector<2x256xf32>
    %165 = arith.addf %164, %163 : vector<2x256xf32>
    %166 = arith.divf %164, %165 : vector<2x256xf32>
    %167 = math.tanh %161 : vector<2x256xf32>
    %168 = vector.extract_strided_slice %166 {offsets = [0, 0], sizes = [2, 64], strides = [1, 1]} : vector<2x256xf32> to vector<2x64xf32>
    %169 = vector.extract_strided_slice %166 {offsets = [0, 64], sizes = [2, 64], strides = [1, 1]} : vector<2x256xf32> to vector<2x64xf32>
    %170 = vector.extract_strided_slice %167 {offsets = [0, 128], sizes = [2, 64], strides = [1, 1]} : vector<2x256xf32> to vector<2x64xf32>
    %171 = vector.extract_strided_slice %166 {offsets = [0, 192], sizes = [2, 64], strides = [1, 1]} : vector<2x256xf32> to vector<2x64xf32>
    %172 = arith.mulf %169, %152 : vector<2x64xf32>
    %173 = arith.mulf %168, %170 : vector<2x64xf32>
    %174 = arith.addf %172, %173 : vector<2x64xf32>
    %175 = math.tanh %174 : vector<2x64xf32>
    %176 = arith.mulf %171, %175 : vector<2x64xf32>
    %177 = vector.extract_strided_slice %176 {offsets = [0, 32], sizes = [2, 32], strides = [1, 1]} : vector<2x64xf32> to vector<2x32xf32>
    %c12 = arith.constant 12 : index
    %c0_29 = arith.constant 0 : index
    %178 = vector.load %arg3[%c12, %c0_29] : memref<16x32xf32, #tpu.memory_space<vmem>>, vector<2x32xf32>
    tpu.vector_store %arg3[%c12, %c0_29], %177 {strides = array<i32>} : memref<16x32xf32, #tpu.memory_space<vmem>>, vector<2x32xf32>,
    %cst_30 = arith.constant dense<0.000000e+00> : vector<2x256xf32>
    %179 = tpu.matmul %176, %0, %cst_30 {dimension_numbers = #tpu.dot_dimension_numbers<[1], [0], [0], [1], [0, 0, 1, 1], [], []>} : vector<2x64xf32>, vector<64x256xf32>, vector<2x256xf32> -> vector<2x256xf32>
    %180 = vector.broadcast %3 : vector<1x256xf32> to vector<2x256xf32>
    %181 = arith.addf %179, %180 : vector<2x256xf32>
    %182 = vector.extract_strided_slice %7 {offsets = [0, 0], sizes = [2, 256], strides = [1, 1]} : vector<16x256xf32> to vector<2x256xf32>
    %183 = arith.addf %181, %182 : vector<2x256xf32>
    %184 = arith.negf %183 : vector<2x256xf32>
    %185 = math.exp %184 : vector<2x256xf32>
    %cst_31 = arith.constant 1.000000e+00 : f32
    %186 = vector.broadcast %cst_31 : f32 to vector<2x256xf32>
    %187 = arith.addf %186, %185 : vector<2x256xf32>
    %188 = arith.divf %186, %187 : vector<2x256xf32>
    %189 = math.tanh %183 : vector<2x256xf32>
    %190 = vector.extract_strided_slice %188 {offsets = [0, 0], sizes = [2, 64], strides = [1, 1]} : vector<2x256xf32> to vector<2x64xf32>
    %191 = vector.extract_strided_slice %188 {offsets = [0, 64], sizes = [2, 64], strides = [1, 1]} : vector<2x256xf32> to vector<2x64xf32>
    %192 = vector.extract_strided_slice %189 {offsets = [0, 128], sizes = [2, 64], strides = [1, 1]} : vector<2x256xf32> to vector<2x64xf32>
    %193 = vector.extract_strided_slice %188 {offsets = [0, 192], sizes = [2, 64], strides = [1, 1]} : vector<2x256xf32> to vector<2x64xf32>
    %194 = arith.mulf %191, %174 : vector<2x64xf32>
    %195 = arith.mulf %190, %192 : vector<2x64xf32>
    %196 = arith.addf %194, %195 : vector<2x64xf32>
    %197 = math.tanh %196 : vector<2x64xf32>
    %198 = arith.mulf %193, %197 : vector<2x64xf32>
    %199 = vector.extract_strided_slice %198 {offsets = [0, 32], sizes = [2, 32], strides = [1, 1]} : vector<2x64xf32> to vector<2x32xf32>
    %c14 = arith.constant 14 : index
    %c0_32 = arith.constant 0 : index
    %200 = vector.load %arg3[%c14, %c0_32] : memref<16x32xf32, #tpu.memory_space<vmem>>, vector<2x32xf32>
    tpu.vector_store %arg3[%c14, %c0_32], %199 {strides = array<i32>} : memref<16x32xf32, #tpu.memory_space<vmem>>, vector<2x32xf32>,
    %c88 = arith.constant 88 : index
    %c0_33 = arith.constant 0 : index
    %201 = vector.load %arg1[%c88, %c0_33] : memref<128x256xf32, #tpu.memory_space<vmem>>, vector<32x256xf32>
    %c120 = arith.constant 120 : index
    %c0_34 = arith.constant 0 : index
    %202 = vector.load %arg1[%c120, %c0_34] : memref<128x256xf32, #tpu.memory_space<vmem>>, vector<1x256xf32>
    %c0_35 = arith.constant 0 : index
    %c0_36 = arith.constant 0 : index
    %203 = vector.load %arg3[%c0_35, %c0_36] : memref<16x32xf32, #tpu.memory_space<vmem>>, vector<16x32xf32>
    %cst_37 = arith.constant dense<0.000000e+00> : vector<16x256xf32>
    %204 = tpu.matmul %203, %201, %cst_37 {dimension_numbers = #tpu.dot_dimension_numbers<[1], [0], [0], [1], [0, 0, 1, 1], [], []>} : vector<16x32xf32>, vector<32x256xf32>, vector<16x256xf32> -> vector<16x256xf32>
    %205 = vector.broadcast %202 : vector<1x256xf32> to vector<16x256xf32>
    %206 = arith.addf %204, %205 : vector<16x256xf32>
    %207 = vector.extract_strided_slice %206 {offsets = [0, 0], sizes = [16, 2], strides = [1, 1]} : vector<16x256xf32> to vector<16x2xf32>
    %c0_38 = arith.constant 0 : index
    %c0_39 = arith.constant 0 : index
    %208 = vector.load %arg2[%c0_38, %c0_39] : memref<16x2xf32, #tpu.memory_space<vmem>>, vector<16x2xf32>
    tpu.vector_store %arg2[%c0_38, %c0_39], %207 {strides = array<i32>} : memref<16x2xf32, #tpu.memory_space<vmem>>, vector<16x2xf32>,
    return
  }
}

</mosaic_0001>

<bundles_post_ra>
// kernel: coordinate_correction_forward.1
= control target key start
LH: loop header
LB: loop body
LE: loop exit
PB: predicated region body
PF: predicated region fallthrough
CT: control target
= control target key end

     0   :  { %vm53_vm0 = vcmask 1043456   ;;  %v1426_v2 = vmov 0.0   ;;  %vm46_vm1 = vcmask 31744   ;;  %v36_v4 = vlaneseq  ;;  %s1427_s17 = smov 64   ;;  %s1780_s1 = inlined_call_operand.vmem [shape: f32[128,256], index: 1, kind: input, shape index: {}]   ;;  %s1781_s0 = inlined_call_operand.vmem [shape: f32[16,4], index: 0, kind: input, shape index: {}]   ;;  %s1782_s2 = inlined_call_operand.vmem [shape: f32[16,2], index: 2, kind: output, shape index: {}]  }
   0x1   :  { %v28_v0 = vld [vmem:[%s1780_s1 + $0x88] sm:$0xf]  ;;  %v27_v1 = vld [vmem:[%s1780_s1 + $0x80] sm:$0xf]  ;;  %124 = vmatprep.mubr.f32.mxu0 %v1426_v2  ;;  %240 = vmatprep.mubr.f32.mxu1 %v1426_v2  ;;  %v14_v22 = vld [vmem:[%s1780_s1 + $0x18] sm:$0xff]  ;;  %vm173_vm2 = vcmask 523264  }
   0x2   :  { %v33_v3 = vld [vmem:[%s1781_s0] sm:$0xff]  ;;  %1142 = vmatprep.subr.msk.mxu0 %vm53_vm0, %v28_v0  ;;  %v1457_v5 = vshrl.u32 %v36_v4, 7  ;;  %v1140_v7 = vld [vmem:[%s1780_s1 + $0x90] ss:$8 sm:$0x3]  ;;  %v12_v21 = vld [vmem:[%s1780_s1 + $0x8] sm:$0xff] }
   0x3   :  { %1143 = vmatpush1.msk.msra.mxu0 %vm53_vm0, %v27_v1  ;;  %v11_v23 = vld [vmem:[%s1780_s1] sm:$0xff]  ;;  %v1491_v24 = vpack.c.bf16 %v14_v22, %v12_v21  ;;  %v13_v25 = vld [vmem:[%s1780_s1 + $0x10] sm:$0xff]  ;;  %v16_v26 = vld [vmem:[%s1780_s1 + $0x28] sm:$0xff]  ;;  %vm281_vm3 = vcmask 254976   ;;  %vm1051_vm4 = vcmask 261120   ;;  %vm1133_vm5 = vcmask 15360  }
   0x4   :  { %1144 = vmatmul.mubr.msk.f32.vlgmr.msra.gmra.mrb[0].mxu0 %vm46_vm1, %v33_v3  ;;  %v1460_v6 = vsub.s32 0, %v1457_v5  ;;  %v42_v13 = vsub.s32 1, %v1457_v5  ;;  %v18_v27 = vld [vmem:[%s1780_s1 + $0x38] sm:$0xff]  ;;  %v1502_v28 = vpack.c.bf16 %v13_v25, %v11_v23  ;;  %v15_v30 = vld [vmem:[%s1780_s1 + $0x20] sm:$0xff]  ;;  %v17_v31 = vld [vmem:[%s1780_s1 + $0x30] sm:$0xff] }
   0x5   :  { %130 = vmatprep.mubr.f32.mxu0 %v1426_v2  ;;  %v1504_v29 = vpack.c.bf16 %v18_v27, %v16_v26  ;;  %v20_v32 = vld [vmem:[%s1780_s1 + $0x48] sm:$0xff]  ;;  %1176 = vmatprep.subr.bf16.mxu1 %v1491_v24  ;;  %v22_v33 = vld [vmem:[%s1780_s1 + $0x58] sm:$0xff]  ;;  %v1521_v34 = vpack.c.bf16 %v17_v31, %v15_v30  ;;  %v19_v36 = vld [vmem:[%s1780_s1 + $0x40] sm:$0xff] }
   0x6   :  { %v1466_v8 = vrot.slane %v1140_v7, %v1460_v6  ;;  %v1475_v14 = vrot.slane %v1140_v7, %v42_v13  ;;  %1192 = vmatprep.subr.bf16.mxu0 %v1491_v24  ;;  %1178 = vmatpush1.bf16.msra.mxu1 %v1502_v28  ;;  %v1525_v35 = vpack.c.bf16 %v22_v33, %v20_v32  ;;  %v21_v37 = vld [vmem:[%s1780_s1 + $0x50] sm:$0xff]  ;;  %v24_v38 = vld [vmem:[%s1780_s1 + $0x68] sm:$0xff]  ;;  %v26_v39 = vld [vmem:[%s1780_s1 + $0x78] sm:$0xff] }
   0x7   :  { %1194 = vmatpush1.bf16.msra.mxu0 %v1502_v28  ;;  %1180 = vmatprep.subr.bf16.mxu1 %v1504_v29  ;;  %v1541_v40 = vpack.c.bf16 %v21_v37, %v19_v36  ;;  %v1545_v41 = vpack.c.bf16 %v26_v39, %v24_v38  ;;  %v23_v42 = vld [vmem:[%s1780_s1 + $0x60] sm:$0xff]  ;;  %v25_v43 = vld [vmem:[%s1780_s1 + $0x70] sm:$0xff]  ;;  %v34_v5 = vld [vmem:[%s1781_s0 + $0x8] sm:$0xff]  ;;  %s1428_s0 = smov 32  }
   0x8   :  { %1196 = vmatprep.subr.bf16.mxu0 %v1504_v29  ;;  %v1555_v44 = vpack.c.bf16 %v25_v43, %v23_v42  ;;  %v1141_v55 = vld [vmem:[%s1780_s1 + $0xa0] ss:$8 sm:$0x3]  ;;  %1145 = vmatmul.mubr.msk.f32.gmra.mrb[2].mxu0 %vm46_vm1, %v34_v5 }
   0x9   :  { %v1580_v56 = vrot.slane %v1141_v55, %v1460_v6  ;;  %v1586_v63 = vrot.slane %v1141_v55, %v42_v13  ;;  %351 = vmatprep.mubr.f32.mxu0 %v1426_v2 }
   0xa   :  { %1182 = vmatpush1.bf16.msra.mxu1 %v1521_v34 }
   0xb   :  { %1198 = vmatpush1.bf16.msra.mxu0 %v1521_v34  ;;  %1184 = vmatprep.subr.bf16.mxu1 %v1525_v35 }
   0xc   :  { %1200 = vmatprep.subr.bf16.mxu0 %v1525_v35 }
   0xe   :  { %1186 = vmatpush1.bf16.msra.mxu1 %v1541_v40 }
   0xf   :  { %1202 = vmatpush1.bf16.msra.mxu0 %v1541_v40  ;;  %1188 = vmatprep.subr.bf16.mxu1 %v1545_v41 }
  0x10   :  { %1204 = vmatprep.subr.bf16.mxu0 %v1545_v41 }
  0x12   :  { %1190 = vmatpush1.bf16.msra.mxu1 %v1555_v44 }
  0x13   :  { %1206 = vmatpush1.bf16.msra.mxu0 %v1555_v44  ;;  %1208 = vmatprep.subr.bf16.mxu1 %v1491_v24 }
  0x14   :  { %1224 = vmatprep.subr.bf16.mxu0 %v1491_v24 }
  0xd7   :  { %v126_v9 = vpop.f32.mrb[0].mxu0 }
  0xd8   :  { %v1469_v10 = vadd.f32 %v126_v9, %v1466_v8  ;;  %v128_v11 = vpop.f32.mrb[1].mxu0 }
  0xd9   :  { %v1478_v15 = vadd.f32 %v128_v11, %v1475_v14 }
  0xda   :  { %v1146_v12 = vmul.f32 -1.442695, %v1469_v10  ;;  %v249_v59 = vrot.slane %v1469_v10, 2  ;;  %v358_v32 = vrot.slane %v1469_v10, 4 }
  0xdb   :  { %v1147_v45 = vmul.f32 -1.442695, %v1478_v15  ;;  %v250_v1 = vrot.slane %v1478_v15, 2  ;;  %v1600_v25 = vpop.f32.mrb[2].mxu0  ;;  %v359_v39 = vrot.slane %v1478_v15, 4 }
  0xdc   :  { %1318 = vpow2.f32 %v1146_v12  ;;  %v1602_v26 = vpop.f32.mrb[3].mxu0 }
  0xdd   :  { %1320 = vtanh.f32 %v1478_v15 }
  0xe6   :  { %v1319_v16 = vpop.eup %1318 }
  0xe7   :  { %v143_v17 = vadd.f32 1.0, %v1319_v16  ;;  %v1321_v18 = vpop.eup %1320 }
  0xe9   :  { %1322 = vrcp.f32 %v143_v17 }
  0xea   :  { %1324 = vpow2.f32 %v1147_v45 }
  0xf3   :  { %v1323_v19 = vpop.eup %1322 }
  0xf4   :  { %v151_v20 = vmul.f32 %v1323_v19, %v1321_v18  ;;  %v1325_v46 = vpop.eup %1324  ;;  %v150_v48 = vmul.f32 0.0, %v1323_v19 }
  0xf5   :  { %v144_v47 = vadd.f32 1.0, %v1325_v46 }
  0xf6   :  { %153 = vrot.lane.b32.xlu0 %v151_v20, %s1427_s17 }
  0xf7   :  { %1326 = vrcp.f32 %v144_v47 }
 0x101   :  { %v1327_v51 = vpop.eup %1326 }
 0x168   :  { %v154_v49 = vpop.permute.xlu0 %153 }
 0x169   :  { %v156_v50 = vadd.f32 %v154_v49, %v150_v48 }
 0x16b   :  { %1328 = vtanh.f32 %v156_v50 }
 0x175   :  { %v1329_v52 = vpop.eup %1328 }
 0x176   :  { %v158_v53 = vmul.f32 %v1329_v52, %v1327_v51 }
 0x178   :  { %171 = vrot.lane.b32.xlu0 %v158_v53, %s1427_s17 }
 0x1ea   :  { %v172_v54 = vpop.permute.xlu0 %171 }
 0x1eb   :  { %1148 = vmatmul.mubr.msk.f32.vlgmr.msra.gmra.mrb[0].mxu1 %vm173_vm2, %v172_v54 }
 0x1ec   :  { %1210 = vmatpush1.bf16.msra.mxu1 %v1502_v28  ;;  %459 = vmatprep.mubr.f32.mxu1 %v1426_v2 }
 0x1ed   :  { %1212 = vmatprep.subr.bf16.mxu1 %v1504_v29 }
 0x1f0   :  { %1214 = vmatpush1.bf16.msra.mxu1 %v1521_v34 }
 0x1f1   :  { %1216 = vmatprep.subr.bf16.mxu1 %v1525_v35 }
 0x1f4   :  { %1218 = vmatpush1.bf16.msra.mxu1 %v1541_v40 }
 0x1f5   :  { %1220 = vmatprep.subr.bf16.mxu1 %v1545_v41 }
 0x1f8   :  { %1222 = vmatpush1.bf16.msra.mxu1 %v1555_v44 }
 0x1f9   :  { %1240 = vmatprep.subr.bf16.mxu1 %v1491_v24 }
 0x2be   :  { %v242_v57 = vpop.f32.mrb[0].mxu1 }
 0x2bf   :  { %v243_v58 = vadd.f32 %v242_v57, %v1580_v56  ;;  %v244_v60 = vpop.f32.mrb[1].mxu1 }
 0x2c0   :  { %v245_v0 = vadd.f32 %v244_v60, %v1586_v63 }
 0x2c1   :  { %v253_v61 = vadd.f32 %v249_v59, %v243_v58 }
 0x2c2   :  { %v254_v3 = vadd.f32 %v250_v1, %v245_v0 }
 0x2c3   :  { %v1149_v62 = vmul.f32 -1.442695, %v253_v61 }
 0x2c4   :  { %v1150_v13 = vmul.f32 -1.442695, %v254_v3 }
 0x2c5   :  { %1330 = vpow2.f32 %v1149_v62  ;;  %v466_v62 = vrot.slane %v1469_v10, 6 }
 0x2c6   :  { %1332 = vtanh.f32 %v254_v3 }
 0x2cf   :  { %v1331_v4 = vpop.eup %1330 }
 0x2d0   :  { %v261_v7 = vadd.f32 1.0, %v1331_v4  ;;  %v1333_v9 = vpop.eup %1332 }
 0x2d2   :  { %1334 = vrcp.f32 %v261_v7  ;;  %v467_v7 = vrot.slane %v1478_v15, 6 }
 0x2d3   :  { %1336 = vpow2.f32 %v1150_v13 }
 0x2dc   :  { %v1335_v11 = vpop.eup %1334 }
 0x2dd   :  { %v269_v12 = vmul.f32 %v1335_v11, %v1333_v9  ;;  %v1337_v16 = vpop.eup %1336  ;;  %v268_v18 = vmul.f32 %v1335_v11, %v156_v50 }
 0x2de   :  { %v262_v17 = vadd.f32 1.0, %v1337_v16 }
 0x2df   :  { %271 = vrot.lane.b32.xlu1 %v269_v12, %s1427_s17 }
 0x2e0   :  { %1338 = vrcp.f32 %v262_v17 }
 0x2ea   :  { %v1339_v21 = vpop.eup %1338 }
 0x351   :  { %v272_v19 = vpop.permute.xlu1 %271 }
 0x352   :  { %v274_v20 = vadd.f32 %v272_v19, %v268_v18 }
 0x354   :  { %1340 = vtanh.f32 %v274_v20 }
 0x35e   :  { %v1341_v22 = vpop.eup %1340 }
 0x35f   :  { %v1596_v23 = vmul.f32 %v1341_v22, %v1339_v21 }
 0x361   :  { %283 = vrot.lane.b32.xlu1 %v1596_v23, %s1427_s17 }
 0x3d3   :  { %v284_v27 = vpop.permute.xlu1 %283 }
 0x3d4   :  { %1151 = vmatmul.mubr.msk.f32.vlgmr.msra.gmra.mrb[4].mxu0 %vm173_vm2, %v284_v27 }
 0x3d5   :  { %1226 = vmatpush1.bf16.msra.mxu0 %v1502_v28  ;;  %567 = vmatprep.mubr.f32.mxu0 %v1426_v2 }
 0x3d6   :  { %1228 = vmatprep.subr.bf16.mxu0 %v1504_v29 }
 0x3d9   :  { %1230 = vmatpush1.bf16.msra.mxu0 %v1521_v34 }
 0x3da   :  { %1232 = vmatprep.subr.bf16.mxu0 %v1525_v35 }
 0x3dd   :  { %1234 = vmatpush1.bf16.msra.mxu0 %v1541_v40 }
 0x3de   :  { %1236 = vmatprep.subr.bf16.mxu0 %v1545_v41 }
 0x3e1   :  { %1238 = vmatpush1.bf16.msra.mxu0 %v1555_v44 }
 0x3e2   :  { %1256 = vmatprep.subr.bf16.mxu0 %v1491_v24 }
 0x4a7   :  { %v353_v30 = vpop.f32.mrb[4].mxu0 }
 0x4a8   :  { %v354_v31 = vadd.f32 %v353_v30, %v1580_v56  ;;  %v355_v33 = vpop.f32.mrb[5].mxu0 }
 0x4a9   :  { %v356_v38 = vadd.f32 %v355_v33, %v1586_v63 }
 0x4aa   :  { %v362_v36 = vadd.f32 %v358_v32, %v354_v31 }
 0x4ab   :  { %v363_v42 = vadd.f32 %v359_v39, %v356_v38 }
 0x4ac   :  { %v1152_v37 = vmul.f32 -1.442695, %v362_v36  ;;  %v1654_v36 = vadd.f32 %v1600_v25, %v1466_v8 }
 0x4ad   :  { %v1153_v49 = vmul.f32 -1.442695, %v363_v42 }
 0x4ae   :  { %1342 = vpow2.f32 %v1152_v37 }
 0x4af   :  { %1344 = vtanh.f32 %v363_v42 }
 0x4b8   :  { %v1343_v43 = vpop.eup %1342 }
 0x4b9   :  { %v370_v45 = vadd.f32 1.0, %v1343_v43  ;;  %v1345_v46 = vpop.eup %1344 }
 0x4bb   :  { %1346 = vrcp.f32 %v370_v45  ;;  %v1661_v45 = vadd.f32 %v1602_v26, %v1475_v14 }
 0x4bc   :  { %1348 = vpow2.f32 %v1153_v49 }
 0x4c5   :  { %v1347_v47 = vpop.eup %1346 }
 0x4c6   :  { %v378_v48 = vmul.f32 %v1347_v47, %v1345_v46  ;;  %v1349_v50 = vpop.eup %1348  ;;  %v377_v52 = vmul.f32 %v1347_v47, %v274_v20 }
 0x4c7   :  { %v371_v51 = vadd.f32 1.0, %v1349_v50 }
 0x4c8   :  { %380 = vrot.lane.b32.xlu0 %v378_v48, %s1427_s17 }
 0x4c9   :  { %1350 = vrcp.f32 %v371_v51 }
 0x4d3   :  { %v1351_v55 = vpop.eup %1350 }
 0x53a   :  { %v381_v53 = vpop.permute.xlu0 %380 }
 0x53b   :  { %v383_v54 = vadd.f32 %v381_v53, %v377_v52 }
 0x53d   :  { %1352 = vtanh.f32 %v383_v54 }
 0x547   :  { %v1353_v57 = vpop.eup %1352 }
 0x548   :  { %v1619_v58 = vmul.f32 %v1353_v57, %v1351_v55 }
 0x54a   :  { %391 = vrot.lane.b32.xlu1 %v1619_v58, %s1427_s17 }
 0x5bc   :  { %v392_v59 = vpop.permute.xlu1 %391 }
 0x5bd   :  { %1154 = vmatmul.mubr.msk.f32.vlgmr.msra.gmra.mrb[2].mxu1 %vm173_vm2, %v392_v59 }
 0x5be   :  { %1242 = vmatpush1.bf16.msra.mxu1 %v1502_v28  ;;  %671 = vmatprep.mubr.f32.mxu1 %v1426_v2 }
 0x5bf   :  { %1244 = vmatprep.subr.bf16.mxu1 %v1504_v29 }
 0x5c2   :  { %1246 = vmatpush1.bf16.msra.mxu1 %v1521_v34 }
 0x5c3   :  { %1248 = vmatprep.subr.bf16.mxu1 %v1525_v35 }
 0x5c6   :  { %1250 = vmatpush1.bf16.msra.mxu1 %v1541_v40 }
 0x5c7   :  { %1252 = vmatprep.subr.bf16.mxu1 %v1545_v41 }
 0x5ca   :  { %1254 = vmatpush1.bf16.msra.mxu1 %v1555_v44 }
 0x5cb   :  { %1272 = vmatprep.subr.bf16.mxu1 %v1491_v24 }
 0x690   :  { %v461_v60 = vpop.f32.mrb[2].mxu1 }
 0x691   :  { %v462_v61 = vadd.f32 %v461_v60, %v1580_v56  ;;  %v463_v0 = vpop.f32.mrb[3].mxu1 }
 0x692   :  { %v464_v4 = vadd.f32 %v463_v0, %v1586_v63 }
 0x693   :  { %v470_v1 = vadd.f32 %v466_v62, %v462_v61  ;;  %v680_v61 = vrot.slane %v1654_v36, 2 }
 0x694   :  { %v471_v9 = vadd.f32 %v467_v7, %v464_v4  ;;  %v681_v4 = vrot.slane %v1661_v45, 2 }
 0x695   :  { %v1155_v3 = vmul.f32 -1.442695, %v470_v1 }
 0x696   :  { %v1156_v17 = vmul.f32 -1.442695, %v471_v9 }
 0x697   :  { %1354 = vpow2.f32 %v1155_v3 }
 0x698   :  { %1356 = vtanh.f32 %v471_v9 }
 0x6a1   :  { %v1355_v11 = vpop.eup %1354 }
 0x6a2   :  { %v478_v12 = vadd.f32 1.0, %v1355_v11  ;;  %v1357_v5 = vpop.eup %1356 }
 0x6a4   :  { %1358 = vrcp.f32 %v478_v12 }
 0x6a5   :  { %1360 = vpow2.f32 %v1156_v17 }
 0x6ae   :  { %v1359_v13 = vpop.eup %1358 }
 0x6af   :  { %v486_v16 = vmul.f32 %v1359_v13, %v1357_v5  ;;  %v1361_v18 = vpop.eup %1360  ;;  %v485_v20 = vmul.f32 %v1359_v13, %v383_v54 }
 0x6b0   :  { %v479_v19 = vadd.f32 1.0, %v1361_v18 }
 0x6b1   :  { %488 = vrot.lane.b32.xlu0 %v486_v16, %s1427_s17 }
 0x6b2   :  { %1362 = vrcp.f32 %v479_v19 }
 0x6bc   :  { %v1363_v27 = vpop.eup %1362 }
 0x723   :  { %v489_v21 = vpop.permute.xlu0 %488 }
 0x724   :  { %v491_v22 = vadd.f32 %v489_v21, %v485_v20 }
 0x726   :  { %1364 = vtanh.f32 %v491_v22 }
 0x730   :  { %v1365_v30 = vpop.eup %1364 }
 0x731   :  { %v1638_v31 = vmul.f32 %v1365_v30, %v1363_v27 }
 0x733   :  { %499 = vrot.lane.b32.xlu1 %v1638_v31, %s1427_s17 }
 0x7a5   :  { %v500_v32 = vpop.permute.xlu1 %499 }
 0x7a6   :  { %1157 = vmatmul.mubr.msk.f32.vlgmr.msra.gmra.mrb[6].mxu0 %vm173_vm2, %v500_v32 }
 0x7a7   :  { %1258 = vmatpush1.bf16.msra.mxu0 %v1502_v28  ;;  %781 = vmatprep.mubr.f32.mxu0 %v1426_v2 }
 0x7a8   :  { %1260 = vmatprep.subr.bf16.mxu0 %v1504_v29 }
 0x7ab   :  { %1262 = vmatpush1.bf16.msra.mxu0 %v1521_v34 }
 0x7ac   :  { %1264 = vmatprep.subr.bf16.mxu0 %v1525_v35 }
 0x7af   :  { %1266 = vmatpush1.bf16.msra.mxu0 %v1541_v40 }
 0x7b0   :  { %1268 = vmatprep.subr.bf16.mxu0 %v1545_v41 }
 0x7b3   :  { %1270 = vmatpush1.bf16.msra.mxu0 %v1555_v44 }
 0x7b4   :  { %1288 = vmatprep.subr.bf16.mxu0 %v1491_v24 }
 0x879   :  { %v569_v33 = vpop.f32.mrb[6].mxu0 }
 0x87a   :  { %v570_v37 = vadd.f32 %v569_v33, %v1580_v56  ;;  %v571_v38 = vpop.f32.mrb[7].mxu0 }
 0x87b   :  { %v572_v43 = vadd.f32 %v571_v38, %v1586_v63  ;;  %v788_v38 = vrot.slane %v1654_v36, 4 }
 0x87c   :  { %v574_v39 = vadd.f32 %v570_v37, %v1654_v36 }
 0x87d   :  { %v575_v24 = vadd.f32 %v572_v43, %v1661_v45 }
 0x87e   :  { %v1158_v42 = vmul.f32 -1.442695, %v574_v39 }
 0x87f   :  { %v1159_v49 = vmul.f32 -1.442695, %v575_v24 }
 0x880   :  { %1366 = vpow2.f32 %v1158_v42 }
 0x881   :  { %1368 = vtanh.f32 %v575_v24 }
 0x88a   :  { %v1367_v46 = vpop.eup %1366 }
 0x88b   :  { %v582_v47 = vadd.f32 1.0, %v1367_v46  ;;  %v1369_v8 = vpop.eup %1368 }
 0x88d   :  { %1370 = vrcp.f32 %v582_v47 }
 0x88e   :  { %1372 = vpow2.f32 %v1159_v49 }
 0x897   :  { %v1371_v25 = vpop.eup %1370 }
 0x898   :  { %v590_v48 = vmul.f32 %v1371_v25, %v1369_v8  ;;  %v1373_v50 = vpop.eup %1372  ;;  %v589_v52 = vmul.f32 %v1371_v25, %v491_v22 }
 0x899   :  { %v583_v51 = vadd.f32 1.0, %v1373_v50 }
 0x89a   :  { %592 = vrot.lane.b32.xlu0 %v590_v48, %s1427_s17 }
 0x89b   :  { %1374 = vrcp.f32 %v583_v51 }
 0x8a5   :  { %v1375_v14 = vpop.eup %1374 }
 0x90c   :  { %v593_v53 = vpop.permute.xlu0 %592 }
 0x90d   :  { %v595_v54 = vadd.f32 %v593_v53, %v589_v52 }
 0x90f   :  { %1376 = vtanh.f32 %v595_v54 }
 0x919   :  { %v1377_v26 = vpop.eup %1376 }
 0x91a   :  { %v1665_v55 = vmul.f32 %v1377_v26, %v1375_v14  ;;  %v896_v26 = vrot.slane %v1654_v36, 6 }
 0x91c   :  { %603 = vrot.lane.b32.xlu1 %v1665_v55, %s1427_s17 }
 0x98e   :  { %v604_v57 = vpop.permute.xlu1 %603 }
 0x98f   :  { %1160 = vmatmul.mubr.msk.f32.vlgmr.msra.gmra.mrb[4].mxu1 %vm173_vm2, %v604_v57 }
 0x990   :  { %1274 = vmatpush1.bf16.msra.mxu1 %v1502_v28  ;;  %889 = vmatprep.mubr.f32.mxu1 %v1426_v2 }
 0x991   :  { %1276 = vmatprep.subr.bf16.mxu1 %v1504_v29 }
 0x994   :  { %1278 = vmatpush1.bf16.msra.mxu1 %v1521_v34 }
 0x995   :  { %1280 = vmatprep.subr.bf16.mxu1 %v1525_v35 }
 0x998   :  { %1282 = vmatpush1.bf16.msra.mxu1 %v1541_v40 }
 0x999   :  { %1284 = vmatprep.subr.bf16.mxu1 %v1545_v41 }
 0x99c   :  { %1286 = vmatpush1.bf16.msra.mxu1 %v1555_v44 }
 0xa62   :  { %v673_v59 = vpop.f32.mrb[4].mxu1 }
 0xa63   :  { %v674_v60 = vadd.f32 %v673_v59, %v1580_v56  ;;  %v675_v62 = vpop.f32.mrb[5].mxu1 }
 0xa64   :  { %v676_v3 = vadd.f32 %v675_v62, %v1586_v63  ;;  %v897_v62 = vrot.slane %v1661_v45, 6 }
 0xa65   :  { %v684_v0 = vadd.f32 %v680_v61, %v674_v60 }
 0xa66   :  { %v685_v7 = vadd.f32 %v681_v4, %v676_v3 }
 0xa67   :  { %v1161_v1 = vmul.f32 -1.442695, %v684_v0 }
 0xa68   :  { %v1162_v16 = vmul.f32 -1.442695, %v685_v7 }
 0xa69   :  { %1378 = vpow2.f32 %v1161_v1 }
 0xa6a   :  { %1380 = vtanh.f32 %v685_v7 }
 0xa73   :  { %v1379_v9 = vpop.eup %1378 }
 0xa74   :  { %v692_v11 = vadd.f32 1.0, %v1379_v9  ;;  %v1381_v12 = vpop.eup %1380 }
 0xa76   :  { %1382 = vrcp.f32 %v692_v11 }
 0xa77   :  { %1384 = vpow2.f32 %v1162_v16 }
 0xa80   :  { %v1383_v5 = vpop.eup %1382 }
 0xa81   :  { %v700_v13 = vmul.f32 %v1383_v5, %v1381_v12  ;;  %v1385_v17 = vpop.eup %1384  ;;  %v699_v19 = vmul.f32 %v1383_v5, %v595_v54 }
 0xa82   :  { %v693_v18 = vadd.f32 1.0, %v1385_v17 }
 0xa83   :  { %702 = vrot.lane.b32.xlu0 %v700_v13, %s1427_s17 }
 0xa84   :  { %1386 = vrcp.f32 %v693_v18 }
 0xa8e   :  { %v1387_v22 = vpop.eup %1386 }
 0xaf5   :  { %v703_v20 = vpop.permute.xlu0 %702 }
 0xaf6   :  { %v705_v21 = vadd.f32 %v703_v20, %v699_v19 }
 0xaf8   :  { %1388 = vtanh.f32 %v705_v21 }
 0xb02   :  { %v1389_v27 = vpop.eup %1388 }
 0xb03   :  { %v1683_v30 = vmul.f32 %v1389_v27, %v1387_v22 }
 0xb05   :  { %713 = vrot.lane.b32.xlu1 %v1683_v30, %s1427_s17 }
 0xb77   :  { %v714_v32 = vpop.permute.xlu1 %713 }
 0xb78   :  { %1163 = vmatmul.mubr.msk.f32.vlgmr.msra.gmra.mrb[8].mxu0 %vm173_vm2, %v714_v32 }
 0xb79   :  { %1290 = vmatpush1.bf16.msra.mxu0 %v1502_v28  ;;  %997 = vmatprep.mubr.f32.mxu0 %v1426_v2 }
 0xb7a   :  { %1292 = vmatprep.subr.bf16.mxu0 %v1504_v29 }
 0xb7d   :  { %1294 = vmatpush1.bf16.msra.mxu0 %v1521_v34  ;;  %v789_v34 = vrot.slane %v1661_v45, 4 }
 0xb7e   :  { %1296 = vmatprep.subr.bf16.mxu0 %v1525_v35 }
 0xb81   :  { %1298 = vmatpush1.bf16.msra.mxu0 %v1541_v40 }
 0xb82   :  { %1300 = vmatprep.subr.bf16.mxu0 %v1545_v41 }
 0xb85   :  { %1302 = vmatpush1.bf16.msra.mxu0 %v1555_v44 }
 0xc4b   :  { %v783_v33 = vpop.f32.mrb[8].mxu0 }
 0xc4c   :  { %v784_v37 = vadd.f32 %v783_v33, %v1580_v56  ;;  %v785_v28 = vpop.f32.mrb[9].mxu0 }
 0xc4d   :  { %v786_v29 = vadd.f32 %v785_v28, %v1586_v63 }
 0xc4e   :  { %v792_v39 = vadd.f32 %v788_v38, %v784_v37 }
 0xc4f   :  { %v793_v35 = vadd.f32 %v789_v34, %v786_v29 }
 0xc50   :  { %v1164_v42 = vmul.f32 -1.442695, %v792_v39  ;;  %v1034_v39 = vld [vmem:[%s1780_s1 + $0xb8] sm:$0xff] }
 0xc51   :  { %v1165_v46 = vmul.f32 -1.442695, %v793_v35 }
 0xc52   :  { %1390 = vpow2.f32 %v1164_v42 }
 0xc53   :  { %1392 = vtanh.f32 %v793_v35  ;;  %v1038_v35 = vld [vmem:[%s1780_s1 + $0xd8] sm:$0xff] }
 0xc5c   :  { %v1391_v43 = vpop.eup %1390 }
 0xc5d   :  { %v800_v40 = vadd.f32 1.0, %v1391_v43  ;;  %v1393_v41 = vpop.eup %1392  ;;  %v1040_v43 = vld [vmem:[%s1780_s1 + $0xe8] sm:$0xff] }
 0xc5f   :  { %1394 = vrcp.f32 %v800_v40 }
 0xc60   :  { %1396 = vpow2.f32 %v1165_v46 }
 0xc69   :  { %v1395_v44 = vpop.eup %1394 }
 0xc6a   :  { %v808_v24 = vmul.f32 %v1395_v44, %v1393_v41  ;;  %v1397_v47 = vpop.eup %1396  ;;  %v807_v25 = vmul.f32 %v1395_v44, %v705_v21  ;;  %v1307_v41 = vpack.c.bf16 %v1040_v43, %v1038_v35  ;;  %v1037_v44 = vld [vmem:[%s1780_s1 + $0xd0] sm:$0xff] }
 0xc6b   :  { %v801_v8 = vadd.f32 1.0, %v1397_v47 }
 0xc6c   :  { %810 = vrot.lane.b32.xlu0 %v808_v24, %s1427_s17  ;;  %v1039_v24 = vld [vmem:[%s1780_s1 + $0xe0] sm:$0xff] }
 0xc6d   :  { %1398 = vrcp.f32 %v801_v8  ;;  %v1309_v46 = vpack.c.bf16 %v1039_v24, %v1037_v44 }
 0xc77   :  { %v1399_v50 = vpop.eup %1398 }
 0xcde   :  { %v811_v48 = vpop.permute.xlu0 %810 }
 0xcdf   :  { %v813_v49 = vadd.f32 %v811_v48, %v807_v25 }
 0xce1   :  { %1400 = vtanh.f32 %v813_v49 }
 0xceb   :  { %v1401_v51 = vpop.eup %1400 }
 0xcec   :  { %v1701_v52 = vmul.f32 %v1401_v51, %v1399_v50 }
 0xcee   :  { %821 = vrot.lane.b32.xlu1 %v1701_v52, %s1427_s17 }
 0xd60   :  { %v822_v53 = vpop.permute.xlu1 %821 }
 0xd61   :  { %1166 = vmatmul.mubr.msk.f32.vlgmr.msra.gmra.mrb[6].mxu1 %vm173_vm2, %v822_v53 }
 0xd62   :  { %1127 = vmatprep.mubr.f32.mxu1 %v1426_v2 }
 0xe34   :  { %v891_v54 = vpop.f32.mrb[6].mxu1 }
 0xe35   :  { %v892_v14 = vadd.f32 %v891_v54, %v1580_v56  ;;  %v893_v57 = vpop.f32.mrb[7].mxu1 }
 0xe36   :  { %v894_v61 = vadd.f32 %v893_v57, %v1586_v63 }
 0xe37   :  { %v900_v59 = vadd.f32 %v896_v26, %v892_v14 }
 0xe38   :  { %v901_v0 = vadd.f32 %v897_v62, %v894_v61 }
 0xe39   :  { %v1167_v60 = vmul.f32 -1.442695, %v900_v59  ;;  %v1172_v59 = vld [vmem:[%s1780_s1 + $0xf0] ss:$8 sm:$0x3] }
 0xe3a   :  { %v1168_v11 = vmul.f32 -1.442695, %v901_v0 }
 0xe3b   :  { %1402 = vpow2.f32 %v1167_v60  ;;  %v1049_v60 = vrot.slane %v1172_v59, %v1460_v6 }
 0xe3c   :  { %1404 = vtanh.f32 %v901_v0 }
 0xe45   :  { %v1403_v1 = vpop.eup %1402 }
 0xe46   :  { %v908_v3 = vadd.f32 1.0, %v1403_v1  ;;  %v1405_v4 = vpop.eup %1404 }
 0xe48   :  { %1406 = vrcp.f32 %v908_v3 }
 0xe49   :  { %1408 = vpow2.f32 %v1168_v11 }
 0xe52   :  { %v1407_v7 = vpop.eup %1406 }
 0xe53   :  { %v916_v9 = vmul.f32 %v1407_v7, %v1405_v4  ;;  %v1409_v36 = vpop.eup %1408  ;;  %v915_v5 = vmul.f32 %v1407_v7, %v813_v49 }
 0xe54   :  { %v909_v12 = vadd.f32 1.0, %v1409_v36 }
 0xe55   :  { %918 = vrot.lane.b32.xlu0 %v916_v9, %s1427_s17 }
 0xe56   :  { %1410 = vrcp.f32 %v909_v12 }
 0xe60   :  { %v1411_v45 = vpop.eup %1410 }
 0xec7   :  { %v919_v13 = vpop.permute.xlu0 %918 }
 0xec8   :  { %v1712_v16 = vadd.f32 %v919_v13, %v915_v5 }
 0xeca   :  { %1412 = vtanh.f32 %v1712_v16 }
 0xed4   :  { %v1413_v17 = vpop.eup %1412 }
 0xed5   :  { %v923_v18 = vmul.f32 %v1413_v17, %v1411_v45 }
 0xed7   :  { %929 = vrot.lane.b32.xlu1 %v923_v18, %s1427_s17 }
 0xedb   :  { %278 = vrot.lane.b32.xlu1 %v1596_v23, %s1428_s0 }
 0xedf   :  { %495 = vrot.lane.b32.xlu1 %v1638_v31, %s1428_s0 }
 0xee3   :  { %709 = vrot.lane.b32.xlu1 %v1683_v30, %s1428_s0 }
 0xee7   :  { %925 = vrot.lane.b32.xlu1 %v923_v18, %s1428_s0 }
 0xf49   :  { %v930_v19 = vpop.permute.xlu1 %929 }
 0xf4a   :  { %1169 = vmatmul.mubr.msk.f32.vlgmr.msra.gmra.mrb[10].mxu0 %vm173_vm2, %v930_v19 }
 0xf4b   :  { %1122 = vmatprep.mubr.f32.mxu0 %v1426_v2 }
 0xf4d   :  { %v279_v20 = vpop.permute.xlu1 %278 }
 0xf4e   :  { %282 = vst.msk [vmem:[#allocation2] sm:$0x3] %vm281_vm3, %v279_v20 }
 0xf51   :  { %v496_v21 = vpop.permute.xlu1 %495 }
 0xf52   :  { %498 = vst.msk [vmem:[#allocation2 + $0x4] sm:$0x3] %vm281_vm3, %v496_v21 }
 0xf55   :  { %v710_v23 = vpop.permute.xlu1 %709 }
 0xf56   :  { %712 = vst.msk [vmem:[#allocation2 + $0x8] sm:$0x3] %vm281_vm3, %v710_v23 }
 0xf59   :  { %v926_v31 = vpop.permute.xlu1 %925 }
 0xf5a   :  { %928 = vst.msk [vmem:[#allocation2 + $0xc] sm:$0x3] %vm281_vm3, %v926_v31 }
0x101d   :  { %v999_v22 = vpop.f32.mrb[10].mxu0 }
0x101e   :  { %v1000_v27 = vadd.f32 %v999_v22, %v1580_v56  ;;  %v1001_v30 = vpop.f32.mrb[11].mxu0  ;;  %v1036_v56 = vld [vmem:[%s1780_s1 + $0xc8] sm:$0xff] }
0x101f   :  { %v1002_v2 = vadd.f32 %v1001_v30, %v1586_v63  ;;  %v1303_v42 = vpack.c.bf16 %v1036_v56, %v1034_v39 }
0x1020   :  { %v1004_v32 = vadd.f32 %v1000_v27, %v1469_v10  ;;  %v1033_v10 = vld [vmem:[%s1780_s1 + $0xb0] sm:$0xff] }
0x1021   :  { %v1005_v37 = vadd.f32 %v1002_v2, %v1478_v15  ;;  %v1035_v15 = vld [vmem:[%s1780_s1 + $0xc0] sm:$0xff]  ;;  %1304 = vmatprep.subr.bf16.mxu0 %v1303_v42  ;;  %1311 = vmatprep.subr.bf16.mxu1 %v1303_v42 }
0x1022   :  { %v1170_v33 = vmul.f32 -1.442695, %v1004_v32  ;;  %v1305_v63 = vpack.c.bf16 %v1035_v15, %v1033_v10 }
0x1023   :  { %v1171_v47 = vmul.f32 -1.442695, %v1005_v37 }
0x1024   :  { %1414 = vpow2.f32 %v1170_v33  ;;  %1306 = vmatpush1.bf16.msra.mxu0 %v1305_v63  ;;  %1313 = vmatpush1.bf16.msra.mxu1 %v1305_v63 }
0x1025   :  { %1416 = vtanh.f32 %v1005_v37  ;;  %1308 = vmatprep.subr.bf16.mxu0 %v1307_v41  ;;  %1312 = vmatprep.subr.bf16.mxu1 %v1307_v41 }
0x1028   :  { %1310 = vmatpush1.bf16.msra.mxu0 %v1309_v46  ;;  %1314 = vmatpush1.bf16.msra.mxu1 %v1309_v46 }
0x102e   :  { %v1415_v38 = vpop.eup %1414 }
0x102f   :  { %v1012_v28 = vadd.f32 1.0, %v1415_v38  ;;  %v1417_v29 = vpop.eup %1416 }
0x1031   :  { %1418 = vrcp.f32 %v1012_v28 }
0x1032   :  { %1420 = vpow2.f32 %v1171_v47 }
0x103b   :  { %v1419_v34 = vpop.eup %1418 }
0x103c   :  { %v1020_v40 = vmul.f32 %v1419_v34, %v1417_v29  ;;  %v1421_v8 = vpop.eup %1420  ;;  %v1019_v48 = vmul.f32 %v1419_v34, %v1712_v16 }
0x103d   :  { %v1013_v25 = vadd.f32 1.0, %v1421_v8 }
0x103e   :  { %1022 = vrot.lane.b32.xlu0 %v1020_v40, %s1427_s17 }
0x103f   :  { %1422 = vrcp.f32 %v1013_v25 }
0x1042   :  { %387 = vrot.lane.b32.xlu0 %v1619_v58, %s1428_s0 }
0x1046   :  { %599 = vrot.lane.b32.xlu0 %v1665_v55, %s1428_s0 }
0x1049   :  { %v1423_v55 = vpop.eup %1422 }
0x104a   :  { %817 = vrot.lane.b32.xlu0 %v1701_v52, %s1428_s0 }
0x10b0   :  { %v1023_v49 = vpop.permute.xlu0 %1022 }
0x10b1   :  { %v1025_v50 = vadd.f32 %v1023_v49, %v1019_v48 }
0x10b3   :  { %1424 = vtanh.f32 %v1025_v50 }
0x10b4   :  { %v388_v51 = vpop.permute.xlu0 %387 }
0x10b5   :  { %390 = vst.msk [vmem:[#allocation2 + $0x2] sm:$0x3] %vm281_vm3, %v388_v51 }
0x10b8   :  { %v600_v58 = vpop.permute.xlu0 %599 }
0x10b9   :  { %602 = vst.msk [vmem:[#allocation2 + $0x6] sm:$0x3] %vm281_vm3, %v600_v58 }
0x10bc   :  { %v818_v53 = vpop.permute.xlu0 %817 }
0x10bd   :  { %v1425_v54 = vpop.eup %1424  ;;  %820 = vst.msk [vmem:[#allocation2 + $0xa] sm:$0x3] %vm281_vm3, %v818_v53 }
0x10be   :  { %v1027_v52 = vmul.f32 %v1425_v54, %v1423_v55 }
0x10c0   :  { %1029 = vrot.lane.b32.xlu0 %v1027_v52, %s1428_s0  ;;  %v1043_v14 = vld [vmem:[#allocation2] sm:$0xff] }
0x10c1   :  { %1173 = vmatmul.mubr.msk.f32.vlgmr.msra.gmra.mrb[12].mxu0 %vm1051_vm4, %v1043_v14 }
0x1132   :  { %v1030_v26 = vpop.permute.xlu0 %1029 }
0x1133   :  { %1032 = vst.msk [vmem:[#allocation2 + $0xe] sm:$0x3] %vm281_vm3, %v1030_v26 }
0x113a   :  { %v1044_v57 = vld [vmem:[#allocation2 + $0x8] sm:$0xff] }
0x113b   :  { %1174 = vmatmul.mubr.msk.f32.vlgmr.msra.gmra.mrb[8].mxu1 %vm1051_vm4, %v1044_v57 }
0x1194   :  { %v1124_v61 = vpop.f32.mrb[12].mxu0 }
0x1195   :  { %v1125_v62 = vadd.f32 %v1124_v61, %v1049_v60  ;;  %v1126_v0 = vpop.f32.mrb[13].mxu0 }
0x1197   :  { %1134 = vst.msk [vmem:[%s1782_s2] sm:$0xff] %vm1133_vm5, %v1125_v62 }
0x120e   :  { %v1129_v1 = vpop.f32.mrb[8].mxu1 }
0x120f   :  { %v1130_v3 = vadd.f32 %v1129_v1, %v1049_v60  ;;  %v1131_v4 = vpop.f32.mrb[9].mxu1 }
0x1211   :  { %1135 = vst.msk [vmem:[%s1782_s2 + $0x8] sm:$0xff] %vm1133_vm5, %v1130_v3 }

</bundles_post_ra>
